<compile_context>
chip_gen: v6e
topology: v6e:2x2x1
jax: 0.10.0
libtpu: 0.0.40
codegen_flags: <defaults>
</compile_context>

<pallas_src>
import functools
import math

import jax
import jax.numpy as jnp
from jax import lax
from jax.experimental import pallas as pl
from jax.experimental.pallas import tpu as pltpu

ALPHA = 1.0
GAMMA = 2.0           # realized as jnp.square below
SCALE = 10.0
LANES = 128
SUBLANES = 8
MAX_TILE_ROWS = 4096  # 4096 x 128 x f32 = 2 MiB per input block
NUM_PARTITIONS = 2    # leading "parallel" grid axis (v7x: one per TensorCore)


def _focal_loss_kernel(p_ref, t_ref, o_ref, *, rows, tile_rows, tiles_per_part,
                       need_mask, hard_targets):
    """One (tile_rows, 128) block: elementwise focal loss + partial-sum accumulate.

    p_ref, t_ref : (tile_rows, 128) input tiles in VMEM (native dtype, cast here)
    o_ref        : (1, 8, 128) f32 output block — resident accumulator for this
                   partition (same block index across the inner grid axis).
    """
    part = pl.program_id(0)
    j = pl.program_id(1)

    @pl.when(j == 0)
    def _init():
        o_ref[...] = jnp.zeros_like(o_ref)

    # In-kernel upcast (VPU); bf16 inputs stream at half the HBM bytes.
    p = p_ref[...].astype(jnp.float32)
    t = t_ref[...].astype(jnp.float32)

    if hard_targets:
        # Fast path for {0,1} targets: 1 transcendental/element instead of 3.
        pt = t * p + (1.0 - t) * (1.0 - p)
        ce = -jnp.maximum(jnp.log(pt), -100.0)   # F.binary_cross_entropy log clamp
    else:
        # Exact soft-target formulation of the PyTorch module.
        log_p = jnp.maximum(jnp.log(p), -100.0)
        log_1mp = jnp.maximum(jnp.log(1.0 - p), -100.0)
        s = log_1mp + t * (log_p - log_1mp)       # == -ce
        ce = -s
        pt = jnp.exp(s)

    # gamma == 2 -> square (VPU, not pow/EUP); alpha*10 folded into the wrapper.
    focal = jnp.square(1.0 - pt) * ce

    def _accumulate(x):
        # Sublane tree: (tile_rows,128) -> (tile_rows/8, 8, 128) summed over the
        # leading axis. Pure vreg adds; a single-vreg accumulator read/write.
        o_ref[...] += x.reshape(-1, SUBLANES, LANES).sum(axis=0)[None, :, :]

    if need_mask:
        g = part * tiles_per_part + j            # global tile index (unclamped)
        row_start = g * tile_rows
        is_tail = row_start + tile_rows > rows   # partial or fully-OOB tile

        @pl.when(jnp.logical_not(is_tail))
        def _acc_full():                         # hot path: no mask arithmetic
            _accumulate(focal)

        @pl.when(is_tail)
        def _acc_masked():
            # Row-bound mask only (lane padding already yields focal == 0).
            row_ids = lax.broadcasted_iota(jnp.int32, (tile_rows, LANES), 0) + row_start
            _accumulate(jnp.where(row_ids < rows, focal, 0.0))
    else:
        _accumulate(focal)


def focal_loss(inputs, targets, reduction="mean", *, hard_targets=False,
               max_tile_rows=MAX_TILE_ROWS):
    """JAX/Pallas equivalent of FocalLoss(alpha=1, gamma=2).forward."""
    assert inputs.shape == targets.shape
    n = int(math.prod(inputs.shape))
    assert n > 0

    p_flat = inputs.reshape(-1)
    t_flat = targets.reshape(-1)

    # Pad flat length to a multiple of 8*128 with p=1, t=1: the -100 log clamp
    # makes the pad's focal contribution exactly 0, so no element masking is
    # needed. In the common case n % 1024 == 0 this is a free reshape.
    block_elems = SUBLANES * LANES
    pad = (-n) % block_elems
    if pad:
        p_flat = jnp.pad(p_flat, (0, pad), constant_values=1)
        t_flat = jnp.pad(t_flat, (0, pad), constant_values=1)
    rows = (n + pad) // LANES              # always a multiple of 8
    p2d = p_flat.reshape(rows, LANES)
    t2d = t_flat.reshape(rows, LANES)

    tile_rows = min(rows, max_tile_rows)   # multiple of 8 (or the full dim)
    num_tiles = pl.cdiv(rows, tile_rows)
    num_parts = NUM_PARTITIONS if num_tiles >= NUM_PARTITIONS else 1
    tiles_per_part = pl.cdiv(num_tiles, num_parts)

    # Row masking needed only for a ragged last tile or a duplicated (clamped)
    # tile from an uneven partition split; skipped at trace time otherwise.
    need_mask = (rows % tile_rows != 0) or (num_tiles % num_parts != 0)

    def in_map(part, j):
        g = part * tiles_per_part + j
        return (jnp.minimum(g, num_tiles - 1), 0)   # clamp duplicate tail tiles

    kernel = functools.partial(
        _focal_loss_kernel,
        rows=rows, tile_rows=tile_rows, tiles_per_part=tiles_per_part,
        need_mask=need_mask, hard_targets=hard_targets)

    partial_sums = pl.pallas_call(
        kernel,
        out_shape=jax.ShapeDtypeStruct((num_parts, SUBLANES, LANES), jnp.float32),
        grid_spec=pltpu.PrefetchScalarGridSpec(
            num_scalar_prefetch=0,
            grid=(num_parts, tiles_per_part),
            in_specs=[
                pl.BlockSpec((tile_rows, LANES), in_map),
                pl.BlockSpec((tile_rows, LANES), in_map),
            ],
            out_specs=pl.BlockSpec((1, SUBLANES, LANES), lambda part, j: (part, 0, 0)),
        ),
        compiler_params=pltpu.CompilerParams(
            dimension_semantics=("parallel", "arbitrary"),
            vmem_limit_bytes=32 * 1024 * 1024,
        ),
    )(p2d, t2d)

    total = (ALPHA * SCALE) * jnp.sum(partial_sums)
    if reduction == "mean":
        return total / jnp.float32(n)
    elif reduction == "sum":
        return total
    else:
        # TODO(synk): reduction='none' needs the full per-element map output;
        # only 'mean'/'sum' are wired through this partial-sum kernel.
        raise NotImplementedError("reduction='none' not supported in this kernel")


def _reference_focal_loss(inputs, targets, reduction="mean"):
    p = inputs.astype(jnp.float32)
    t = targets.astype(jnp.float32)
    ce = -(t * jnp.maximum(jnp.log(p), -100.0)
           + (1.0 - t) * jnp.maximum(jnp.log(1.0 - p), -100.0))
    pt = jnp.exp(-ce)
    focal = ALPHA * (1.0 - pt) ** GAMMA * ce * 10.0
    return jnp.mean(focal) if reduction == "mean" else jnp.sum(focal)


if __name__ == "__main__":
    key = jax.random.PRNGKey(0)
    k1, k2, k3, k4, k5, k6 = jax.random.split(key, 6)

    # 1) Small NCHW probability maps (single-tile, unmasked path).
    B, C, H, W = 2, 4, 16, 16
    inputs = jax.nn.sigmoid(jax.random.normal(k1, (B, C, H, W), jnp.float32))
    targets = (jax.random.uniform(k2, (B, C, H, W)) > 0.5).astype(jnp.float32)

    loss = jax.block_until_ready(focal_loss(inputs, targets, reduction="mean"))
    ref = _reference_focal_loss(inputs, targets)
    assert jnp.allclose(loss, ref, rtol=1e-5, atol=1e-6), (loss, ref)

    loss_sum = jax.block_until_ready(focal_loss(inputs, targets, reduction="sum"))
    ref_sum = _reference_focal_loss(inputs, targets, reduction="sum")
    assert jnp.allclose(loss_sum, ref_sum, rtol=1e-5, atol=1e-4), (loss_sum, ref_sum)

    # Hard-target fast path (1 transcendental/element) on the same data.
    loss_fast = jax.block_until_ready(
        focal_loss(inputs, targets, reduction="mean", hard_targets=True))
    assert jnp.allclose(loss_fast, ref, rtol=1e-4, atol=1e-6), (loss_fast, ref)

    # 2) bf16 inputs with a ragged size (n % 1024 != 0): in-kernel upcast +
    #    host tail pad; forced small tiles exercise the multi-tile split, the
    #    masked tail tile, and the clamped duplicate tile of an uneven 2-way
    #    partition.
    B2, C2, H2, W2 = 4, 4, 129, 67
    inputs2 = jax.nn.sigmoid(
        jax.random.normal(k3, (B2, C2, H2, W2), jnp.float32)).astype(jnp.bfloat16)
    targets2 = (jax.random.uniform(k4, (B2, C2, H2, W2)) > 0.5).astype(jnp.bfloat16)

    loss2 = jax.block_until_ready(
        focal_loss(inputs2, targets2, reduction="mean", max_tile_rows=512))
    ref2 = _reference_focal_loss(inputs2, targets2)
    assert jnp.allclose(loss2, ref2, rtol=1e-4, atol=1e-6), (loss2, ref2)

    # 3) Multi-tile f32 case at the default tile size (2-partition grid,
    #    ragged final tile).
    B3, C3, H3, W3 = 4, 8, 129, 129
    inputs3 = jax.nn.sigmoid(jax.random.normal(k5, (B3, C3, H3, W3), jnp.float32))
    targets3 = (jax.random.uniform(k6, (B3, C3, H3, W3)) > 0.5).astype(jnp.float32)

    loss3 = jax.block_until_ready(focal_loss(inputs3, targets3, reduction="mean"))
    ref3 = _reference_focal_loss(inputs3, targets3)
    assert jnp.allclose(loss3, ref3, rtol=1e-4, atol=1e-6), (loss3, ref3)

    print("KERNEL_OK")
</pallas_src>

<mosaic_0001>
module attributes {stable_mosaic.version = 11 : i64} {
  func.func @_focal_loss_kernel(%arg0: i32, %arg1: i32, %arg2: memref<16x128xf32, #tpu.memory_space<vmem>>, %arg3: memref<16x128xf32, #tpu.memory_space<vmem>>, %arg4: memref<1x8x128xf32, #tpu.memory_space<vmem>>) attributes {dimension_semantics = [#tpu.dimension_semantics<parallel>, #tpu.dimension_semantics<arbitrary>], iteration_bounds = array<i64: 1, 1>, scalar_prefetch = 0 : i64, scratch_operands = 0 : i64, tpu.core_type = #tpu.core_type<tc>, window_params = [{transform_indices = @transform_0, window_bounds = array<i64: 16, 128>}, {transform_indices = @transform_1, window_bounds = array<i64: 16, 128>}, {transform_indices = @transform_2, window_bounds = array<i64: 1, 8, 128>}]} {
    %c0_i32 = arith.constant 0 : i32
    %0 = arith.cmpi eq, %arg1, %c0_i32 : i32
    %1 = arith.extui %0 : i1 to i32
    %c0_i32_0 = arith.constant 0 : i32
    %2 = arith.cmpi ne, %1, %c0_i32_0 : i32
    scf.if %2 {
      %cst_15 = arith.constant 0.000000e+00 : f32
      %29 = vector.broadcast %cst_15 : f32 to vector<1x8x128xf32>
      %c0_16 = arith.constant 0 : index
      %c0_17 = arith.constant 0 : index
      %c0_18 = arith.constant 0 : index
      %30 = vector.load %arg4[%c0_16, %c0_17, %c0_18] : memref<1x8x128xf32, #tpu.memory_space<vmem>>, vector<1x8x128xf32>
      tpu.vector_store %arg4[%c0_16, %c0_17, %c0_18], %29 {strides = array<i32>} : memref<1x8x128xf32, #tpu.memory_space<vmem>>, vector<1x8x128xf32>,
    } else {
    }
    %c0 = arith.constant 0 : index
    %c0_1 = arith.constant 0 : index
    %3 = vector.load %arg2[%c0, %c0_1] : memref<16x128xf32, #tpu.memory_space<vmem>>, vector<16x128xf32>
    %c0_2 = arith.constant 0 : index
    %c0_3 = arith.constant 0 : index
    %4 = vector.load %arg3[%c0_2, %c0_3] : memref<16x128xf32, #tpu.memory_space<vmem>>, vector<16x128xf32>
    %5 = math.log %3 : vector<16x128xf32>
    %cst = arith.constant -1.000000e+02 : f32
    %6 = vector.broadcast %cst : f32 to vector<16x128xf32>
    %7 = arith.maximumf %5, %6 : vector<16x128xf32>
    %cst_4 = arith.constant 1.000000e+00 : f32
    %8 = vector.broadcast %cst_4 : f32 to vector<16x128xf32>
    %9 = arith.subf %8, %3 : vector<16x128xf32>
    %10 = math.log %9 : vector<16x128xf32>
    %cst_5 = arith.constant -1.000000e+02 : f32
    %11 = vector.broadcast %cst_5 : f32 to vector<16x128xf32>
    %12 = arith.maximumf %10, %11 : vector<16x128xf32>
    %13 = arith.subf %7, %12 : vector<16x128xf32>
    %14 = arith.mulf %4, %13 : vector<16x128xf32>
    %15 = arith.addf %12, %14 : vector<16x128xf32>
    %cst_6 = arith.constant 0.000000e+00 : f32
    %16 = vector.broadcast %cst_6 : f32 to vector<16x128xf32>
    %17 = arith.subf %16, %15 : vector<16x128xf32>
    %18 = math.exp %15 : vector<16x128xf32>
    %cst_7 = arith.constant 1.000000e+00 : f32
    %19 = vector.broadcast %cst_7 : f32 to vector<16x128xf32>
    %20 = arith.subf %19, %18 : vector<16x128xf32>
    %21 = arith.mulf %20, %20 : vector<16x128xf32>
    %22 = arith.mulf %21, %17 : vector<16x128xf32>
    %c0_8 = arith.constant 0 : index
    %c0_9 = arith.constant 0 : index
    %c0_10 = arith.constant 0 : index
    %23 = vector.load %arg4[%c0_8, %c0_9, %c0_10] : memref<1x8x128xf32, #tpu.memory_space<vmem>>, vector<1x8x128xf32>
    %24 = vector.shape_cast %22 : vector<16x128xf32> to vector<2x8x128xf32>
    %cst_11 = arith.constant dense<0.000000e+00> : vector<8x128xf32>
    %25 = vector.multi_reduction <add>, %24, %cst_11 [0] : vector<2x8x128xf32> to vector<8x128xf32>
    %26 = vector.shape_cast %25 : vector<8x128xf32> to vector<1x8x128xf32>
    %27 = arith.addf %23, %26 : vector<1x8x128xf32>
    %c0_12 = arith.constant 0 : index
    %c0_13 = arith.constant 0 : index
    %c0_14 = arith.constant 0 : index
    %28 = vector.load %arg4[%c0_12, %c0_13, %c0_14] : memref<1x8x128xf32, #tpu.memory_space<vmem>>, vector<1x8x128xf32>
    tpu.vector_store %arg4[%c0_12, %c0_13, %c0_14], %27 {strides = array<i32>} : memref<1x8x128xf32, #tpu.memory_space<vmem>>, vector<1x8x128xf32>,
    return
  }
  func.func @transform_0(%arg0: i32, %arg1: i32) -> (i32, i32) {
    %c1_i32 = arith.constant 1 : i32
    %0 = arith.muli %arg0, %c1_i32 : i32
    %1 = arith.addi %0, %arg1 : i32
    %c0_i32 = arith.constant 0 : i32
    %2 = arith.minsi %1, %c0_i32 : i32
    %c0_i32_0 = arith.constant 0 : i32
    %c0_i32_1 = arith.constant 0 : i32
    return %2, %c0_i32_0 : i32, i32
  }
  func.func @transform_1(%arg0: i32, %arg1: i32) -> (i32, i32) {
    %c1_i32 = arith.constant 1 : i32
    %0 = arith.muli %arg0, %c1_i32 : i32
    %1 = arith.addi %0, %arg1 : i32
    %c0_i32 = arith.constant 0 : i32
    %2 = arith.minsi %1, %c0_i32 : i32
    %c0_i32_0 = arith.constant 0 : i32
    %c0_i32_1 = arith.constant 0 : i32
    return %2, %c0_i32_0 : i32, i32
  }
  func.func @transform_2(%arg0: i32, %arg1: i32) -> (i32, i32, i32) {
    %c0_i32 = arith.constant 0 : i32
    %c0_i32_0 = arith.constant 0 : i32
    %c0_i32_1 = arith.constant 0 : i32
    return %arg0, %c0_i32, %c0_i32_0 : i32, i32, i32
  }
}

</mosaic_0001>

<bundles_post_ra>
// kernel: tpu_custom_call.1
= control target key start
LH: loop header
LB: loop body
LE: loop exit
PB: predicated region body
PF: predicated region fallthrough
CT: control target
= control target key end

     0   :  { %7 = vsyncpa [#allocation3], 0  ;;  %s238_s0 = inlined_call_operand.hbm [shape: f32[16,128], index: 0, kind: input, shape index: {}]   ;;  %s239_s1 = inlined_call_operand.hbm [shape: f32[16,128], index: 1, kind: input, shape index: {}]   ;;  %s240_s2 = inlined_call_operand.hbm [shape: f32[1,8,128], index: 2, kind: output, shape index: {}]  }
   0x1   :  { %8 = vsyncpa [#allocation6], 0 }
   0x2   :  { %9 = vsyncpa [#allocation4], 0  ;;  %s209_s9 = smov [#allocation2]  }
   0x3   :  { %s21_s10 = sshll.u32 %s209_s9, 4  ;;  %s22_s10 = int_to_ptr.vmem [resolvable:$true] %s21_s10 }
   0x4   :  { %s151_s11 = scalar_lea.vmem %s22_s10, 256  ;;  %p156_p1 = scmp.lt.s32.totalorder %s22_s10, %s22_s10 }
   0x5   :  { %p152_p0 = scmp.ne.s32.totalorder %s22_s10, %s151_s11  ;;  %p157_p2 = scmp.lt.s32.totalorder %s151_s11, %s151_s11 }
   0x7   :  { %p158_p3 = por %p157_p2, %p156_p1 }
   0x9   :  { %p159_p4 = pnand %p158_p3, %p152_p0 }
   0xb   :  { %162 = shalt.err (!%p159_p4)
}
   0xc   :  { %s210_s12 = smov 128   ;;  %s211_s13 = smov 8  }
   0xd   :  { %27 = dma.hbm_to_vmem [thread:$0]  %s238_s0, 256, %s22_s10, [#allocation3], %s210_s12, %s210_s12, %s211_s13  }
   0xe   :  { %s212_s16 = smov [#allocation5]  }
   0xf   :  { %s39_s17 = sshll.u32 %s212_s16, 4  ;;  %s40_s17 = int_to_ptr.vmem [resolvable:$true] %s39_s17 }
  0x10   :  { %s171_s18 = scalar_lea.vmem %s40_s17, 256  ;;  %p176_p6 = scmp.lt.s32.totalorder %s40_s17, %s40_s17 }
  0x11   :  { %p172_p5 = scmp.ne.s32.totalorder %s40_s17, %s171_s18  ;;  %p177_p7 = scmp.lt.s32.totalorder %s171_s18, %s171_s18 }
  0x13   :  { %p178_p8 = por %p177_p7, %p176_p6 }
  0x15   :  { %p179_p9 = pnand %p178_p8, %p172_p5 }
  0x17   :  { %182 = shalt.err (!%p179_p9)
}
  0x18   :  { %45 = dma.hbm_to_vmem [thread:$0]  %s239_s1, 256, %s40_s17, [#allocation6], %s210_s12, %s210_s12, %s211_s13  }
  0x19   :  { %203 = dma.done.wait [#allocation3], 256  }
  0x1a   :  { %204 = vsyncadd [#allocation3], 4294967040 }
  0x1b   :  { %205 = dma.done.wait [#allocation6], 256  }
  0x1c   :  { %206 = vsyncadd [#allocation6], 4294967040  ;;  %v65_v0 = vld [vmem:[#allocation2] sm:$0xff]  ;;  %v66_v1 = vld [vmem:[#allocation2 + $0x8] sm:$0xff]  ;;  %s213_s0 = smov [#allocation7]  }
  0x1d   :  { %131 = vlog2.f32 %v65_v0  ;;  %v75_v2 = vsub.f32 1.0, %v65_v0  ;;  %v76_v3 = vsub.f32 1.0, %v66_v1  ;;  %v67_v15 = vld [vmem:[#allocation5] sm:$0xff]  ;;  %v68_v17 = vld [vmem:[#allocation5 + $0x8] sm:$0xff]  ;;  %s111_s1 = sshll.u32 %s213_s0, 4  ;;  %s112_s1 = int_to_ptr.vmem [resolvable:$true] %s111_s1 }
  0x1e   :  { %133 = vlog2.f32 %v66_v1  ;;  %s183_s21 = scalar_lea.vmem %s112_s1, 128  ;;  %p188_p11 = scmp.lt.s32.totalorder %s112_s1, %s112_s1 }
  0x1f   :  { %135 = vlog2.f32 %v75_v2  ;;  %p184_p10 = scmp.ne.s32.totalorder %s112_s1, %s183_s21  ;;  %p189_p12 = scmp.lt.s32.totalorder %s183_s21, %s183_s21 }
  0x20   :  { %137 = vlog2.f32 %v76_v3 }
  0x21   :  { %p190_p13 = por %p189_p12, %p188_p11 }
  0x23   :  { %p191_p0 = pnand %p190_p13, %p184_p10 }
  0x2a   :  { %v132_v4 = vpop.eup %131 }
  0x2b   :  { %v134_v5 = vpop.eup %133  ;;  %v70_v6 = vmul.f32 0.6931472, %v132_v4 }
  0x2c   :  { %v136_v7 = vpop.eup %135  ;;  %v72_v8 = vmul.f32 0.6931472, %v134_v5 }
  0x2d   :  { %v138_v9 = vpop.eup %137  ;;  %v73_v10 = vmax.f32 %v70_v6, -100.0  ;;  %v78_v11 = vmul.f32 0.6931472, %v136_v7 }
  0x2e   :  { %v74_v12 = vmax.f32 %v72_v8, -100.0  ;;  %v80_v13 = vmul.f32 0.6931472, %v138_v9 }
  0x2f   :  { %v81_v14 = vmax.f32 %v78_v11, -100.0 }
  0x30   :  { %v82_v16 = vmax.f32 %v80_v13, -100.0 }
  0x31   :  { %v83_v18 = vsub.f32 %v73_v10, %v81_v14 }
  0x32   :  { %v84_v19 = vsub.f32 %v74_v12, %v82_v16 }
  0x33   :  { %v85_v20 = vmul.f32 %v83_v18, %v67_v15 }
  0x34   :  { %v86_v21 = vmul.f32 %v84_v19, %v68_v17 }
  0x35   :  { %v87_v22 = vadd.f32 %v85_v20, %v81_v14 }
  0x36   :  { %v88_v23 = vadd.f32 %v86_v21, %v82_v16 }
  0x37   :  { %v91_v24 = vmul.f32 1.442695, %v87_v22  ;;  %v89_v28 = vsub.f32 0.0, %v87_v22 }
  0x38   :  { %v93_v25 = vmul.f32 1.442695, %v88_v23  ;;  %v90_v30 = vsub.f32 0.0, %v88_v23 }
  0x39   :  { %139 = vpow2.f32 %v91_v24 }
  0x3a   :  { %141 = vpow2.f32 %v93_v25 }
  0x46   :  { %v140_v26 = vpop.eup %139 }
  0x47   :  { %v142_v27 = vpop.eup %141  ;;  %v95_v29 = vsub.f32 1.0, %v140_v26 }
  0x48   :  { %v96_v31 = vsub.f32 1.0, %v142_v27 }
  0x49   :  { %v97_v32 = vmul.f32 %v95_v29, %v95_v29 }
  0x4a   :  { %v98_v33 = vmul.f32 %v96_v31, %v96_v31 }
  0x4b   :  { %v99_v34 = vmul.f32 %v97_v32, %v89_v28 }
  0x4c   :  { %v100_v35 = vmul.f32 %v98_v33, %v90_v30 }
  0x4e   :  { %v102_v36 = vadd.f32 %v100_v35, %v99_v34 }
  0x50   :  { %104 = vst [vmem:[#allocation7] sm:$0xff] %v102_v36 }
  0x51   :  { %194 = shalt.err (!%p191_p0)
}
  0x52   :  { %114 = dma.vmem_to_hbm [thread:$0]  %s112_s1, 128, %s240_s2, [#allocation4]  }
  0x53   :  { %207 = dma.done.wait [#allocation4], 128  }
  0x54   :  { %208 = vsyncadd [#allocation4], 4294967168 }
  0x55   :  { %118 = vsyncpa [#allocation3], 1 }
  0x56   :  { %119 = vsyncpa [#allocation6], 1 }
  0x57   :  { %120 = vsyncpa [#allocation4], 1 }

</bundles_post_ra>
